<compile_context>
chip_gen: v7x
topology: tpu7x:2x2x1
jax: 0.10.0
libtpu: 0.0.40
codegen_flags: <defaults>
</compile_context>

<pallas_src>
import math

import jax
import jax.numpy as jnp
from jax.experimental import pallas as pl
from jax.experimental.pallas import tpu as pltpu


_LANE = 128
_SUBLANE = 8
# Budget for the pipelined per-step blocks + in-kernel intermediates; leaves
# headroom under the 32 MiB scoped-VMEM limit (portable to v7x's 64 MiB VMEM).
_VMEM_BUDGET_BYTES = 20 * 1024 * 1024


def _round_up(x, m):
    return ((x + m - 1) // m) * m


def _pick_batch_block(batch, seq_len, n_pad, hidden, qk_size):
    """VMEM-derived batch block size.

    Per batch element, per grid step (f32 bytes):
      pipelined (double-buffered): query + key + mask + output blocks
      in-kernel intermediates:     ql + kl + scores
    If the whole batch fits -> grid=1 (the grid is a serial loop on v5e/v6e and
    ~0.35us/step overhead dominates this tiny kernel). Otherwise use a
    multiple-of-8 block and pad the batch so it divides evenly.
    """
    per_b_pipe = (seq_len * hidden + n_pad * hidden + n_pad
                  + seq_len * n_pad) * 4 * 2
    per_b_tmp = (seq_len * qk_size + n_pad * qk_size + seq_len * n_pad) * 4
    per_b = per_b_pipe + per_b_tmp
    weights = (2 * hidden * qk_size + 2 * qk_size) * 4 * 2  # worst case 2 bufs
    avail = max(_VMEM_BUDGET_BYTES - weights, per_b)
    bb = max(1, avail // per_b)
    if bb >= batch:
        return batch, batch
    bb = max(_SUBLANE, (bb // _SUBLANE) * _SUBLANE)
    # TODO(synk): on v7x prefer an even number of >=2 grid steps so the
    # "parallel" batch axis splits across both TensorCores.
    return bb, _round_up(batch, bb)


def _make_kernel_seq(bb, seq_len, num_keys, qk_size):
    """3-D query path: S > 1 (or arbitrary S), batched einsum scores."""
    inv_sqrt = 1.0 / math.sqrt(qk_size)

    def kernel(q_ref, k_ref, m_ref, w_ref, b_ref, out_ref):
        wq = w_ref[0]                      # (H, QK)  == PyTorch weight^T
        wk = w_ref[1]                      # (H, QK)
        bq = b_ref[0:1, :]                 # (1, QK)
        bk = b_ref[1:2, :]                 # (1, QK)

        # Projections: inputs arrive pre-flattened (rows, H), so one 2-D matmul
        # fills the MXU row dimension across the whole batch block.
        ql = (jnp.dot(q_ref[...], wq, preferred_element_type=jnp.float32) + bq
              ).reshape(bb, seq_len, qk_size)
        kl = (jnp.dot(k_ref[...], wk, preferred_element_type=jnp.float32) + bk
              ).reshape(bb, num_keys, qk_size)

        scores = jnp.einsum("bsq,bnq->bsn", ql, kl,
                            preferred_element_type=jnp.float32) * inv_sqrt
        ext = (1.0 - m_ref[...])[:, None, :] * -10000.0       # (bb, 1, N)
        out_ref[...] = (scores + ext).astype(out_ref.dtype)

    return kernel


def _make_kernel_vec(bb, num_keys, qk_size):
    """2-D query path (S == 1): stay 2-D end-to-end."""
    inv_sqrt = 1.0 / math.sqrt(qk_size)

    def kernel(q_ref, k_ref, m_ref, w_ref, b_ref, out_ref):
        wq = w_ref[0]
        wk = w_ref[1]
        bq = b_ref[0:1, :]
        bk = b_ref[1:2, :]

        ql = jnp.dot(q_ref[...], wq, preferred_element_type=jnp.float32) + bq    # (bb, QK)
        kl = (jnp.dot(k_ref[...], wk, preferred_element_type=jnp.float32) + bk
              ).reshape(bb, num_keys, qk_size)                                   # (bb, N, QK)

        # S = 1: a single-row MXU matmul would leave the MXU ~99% idle, so do
        # the dot product on the VPU (multiply) + XLU (lane reduction).
        scores = jnp.sum(kl * ql[:, None, :], axis=-1) * inv_sqrt                # (bb, N)
        ext = (1.0 - m_ref[...]) * -10000.0
        out_ref[...] = (scores + ext).astype(out_ref.dtype)

    return kernel


def ocr_ptr_net(query_inputs, key_inputs, attention_mask, params):
    """params: w_query/w_key of shape (hidden, qk) (PyTorch weight^T),
    b_query/b_key of shape (qk,)."""
    squeeze_result = (query_inputs.ndim == 2)
    if squeeze_result:
        query_inputs = query_inputs[:, None, :]

    batch, seq_len, hidden = query_inputs.shape
    num_keys = key_inputs.shape[1]
    qk_size = params["w_query"].shape[1]

    # Lane-dense key/output layout: pad num_keys up to a multiple of 128.
    n_pad = _round_up(num_keys, _LANE)
    bb, batch_pad = _pick_batch_block(batch, seq_len, n_pad, hidden, qk_size)
    grid = (batch_pad // bb,)

    q = query_inputs.astype(jnp.float32)
    k = key_inputs.astype(jnp.float32)
    m = attention_mask.astype(jnp.float32)
    if n_pad != num_keys:
        k = jnp.pad(k, ((0, 0), (0, n_pad - num_keys), (0, 0)))
        m = jnp.pad(m, ((0, 0), (0, n_pad - num_keys)))   # mask=0 -> ext=-10000
    if batch_pad != batch:
        pb = batch_pad - batch
        q = jnp.pad(q, ((0, pb), (0, 0), (0, 0)))
        k = jnp.pad(k, ((0, pb), (0, 0), (0, 0)))
        m = jnp.pad(m, ((0, pb), (0, 0)))

    # Pack the two linears into single constant-index operands (DMA'd once,
    # reused for every grid step).
    w = jnp.stack([params["w_query"], params["w_key"]]).astype(jnp.float32)  # (2, H, QK)
    b = jnp.stack([params["b_query"], params["b_key"]]).astype(jnp.float32)  # (2, QK)

    # Wrapper-side flattening: clean 2-D (rows, H) MXU operands, no in-kernel
    # input relayouts.
    k2d = k.reshape(batch_pad * n_pad, hidden)

    if squeeze_result:
        q_in = q.reshape(batch_pad, hidden)
        q_spec = pl.BlockSpec((bb, hidden), lambda i: (i, 0))
        out_spec = pl.BlockSpec((bb, n_pad), lambda i: (i, 0))
        out_shape = jax.ShapeDtypeStruct((batch_pad, n_pad), jnp.float32)
        kernel = _make_kernel_vec(bb, n_pad, qk_size)
    else:
        q_in = q.reshape(batch_pad * seq_len, hidden)
        q_spec = pl.BlockSpec((bb * seq_len, hidden), lambda i: (i, 0))
        out_spec = pl.BlockSpec((bb, seq_len, n_pad), lambda i: (i, 0, 0))
        out_shape = jax.ShapeDtypeStruct((batch_pad, seq_len, n_pad), jnp.float32)
        kernel = _make_kernel_seq(bb, seq_len, n_pad, qk_size)

    k_spec = pl.BlockSpec((bb * n_pad, hidden), lambda i: (i, 0))
    m_spec = pl.BlockSpec((bb, n_pad), lambda i: (i, 0))

    def call(single_buffer_weights):
        wb_kwargs = ({"pipeline_mode": pl.Buffered(1)}
                     if single_buffer_weights else {})
        grid_spec = pltpu.PrefetchScalarGridSpec(
            num_scalar_prefetch=0,
            grid=grid,
            in_specs=[
                q_spec,
                k_spec,
                m_spec,
                pl.BlockSpec((2, hidden, qk_size), lambda i: (0, 0, 0), **wb_kwargs),
                pl.BlockSpec((2, qk_size), lambda i: (0, 0), **wb_kwargs),
            ],
            out_specs=out_spec,
        )
        return pl.pallas_call(
            kernel,
            out_shape=out_shape,
            grid_spec=grid_spec,
            compiler_params=pltpu.CompilerParams(
                dimension_semantics=("parallel",),
                vmem_limit_bytes=32 * 1024 * 1024),
        )(q_in, k2d, m, w, b)

    try:
        out = call(single_buffer_weights=True)
    except Exception:
        # Fallback if this Pallas version rejects pipeline_mode on the weight
        # operands; default double-buffering is still correct.
        out = call(single_buffer_weights=False)

    if squeeze_result:
        return out[:batch, :num_keys]
    return out[:batch, :, :num_keys]


def _reference(query_inputs, key_inputs, attention_mask, params, qk_size):
    squeeze = (query_inputs.ndim == 2)
    q = query_inputs[:, None, :] if squeeze else query_inputs
    ext = ((1.0 - attention_mask) * -10000.0)[:, None, :]
    ql = q @ params["w_query"] + params["b_query"]
    kl = key_inputs @ params["w_key"] + params["b_key"]
    scores = jnp.einsum("bsq,bnq->bsn", ql, kl) / math.sqrt(qk_size) + ext
    return scores[:, 0, :] if squeeze else scores


if __name__ == "__main__":
    key = jax.random.PRNGKey(0)
    batch, seq_len, num_keys, hidden = 2, 8, 16, 32
    qk_size = hidden  # OcrPtrNet default: query_key_size = hidden_size

    ks = jax.random.split(key, 8)
    q3 = jax.random.normal(ks[0], (batch, seq_len, hidden), jnp.float32)
    q2 = jax.random.normal(ks[1], (batch, hidden), jnp.float32)
    k = jax.random.normal(ks[2], (batch, num_keys, hidden), jnp.float32)
    mask = (jax.random.uniform(ks[3], (batch, num_keys)) > 0.3).astype(jnp.float32)

    params = {
        "w_query": jax.random.normal(ks[4], (hidden, qk_size), jnp.float32) * 0.05,
        "b_query": jax.random.normal(ks[5], (qk_size,), jnp.float32) * 0.05,
        "w_key":   jax.random.normal(ks[6], (hidden, qk_size), jnp.float32) * 0.05,
        "b_key":   jax.random.normal(ks[7], (qk_size,), jnp.float32) * 0.05,
    }

    # 3-D query path
    out3 = jax.block_until_ready(ocr_ptr_net(q3, k, mask, params))
    ref3 = _reference(q3, k, mask, params, qk_size)
    assert out3.shape == (batch, seq_len, num_keys), out3.shape
    assert jnp.allclose(out3, ref3, atol=2e-3, rtol=1e-5), \
        float(jnp.abs(out3 - ref3).max())

    # 2-D query path (squeeze_result branch of the module)
    out2 = jax.block_until_ready(ocr_ptr_net(q2, k, mask, params))
    ref2 = _reference(q2, k, mask, params, qk_size)
    assert out2.shape == (batch, num_keys), out2.shape
    assert jnp.allclose(out2, ref2, atol=2e-3, rtol=1e-5), \
        float(jnp.abs(out2 - ref2).max())

    print("KERNEL_OK")
</pallas_src>

<mosaic_0001>
module attributes {stable_mosaic.version = 11 : i64} {
  func.func @kernel(%arg0: i32, %arg1: memref<16x32xf32, #tpu.memory_space<vmem>>, %arg2: memref<256x32xf32, #tpu.memory_space<vmem>>, %arg3: memref<2x128xf32, #tpu.memory_space<vmem>>, %arg4: memref<2x32x32xf32, #tpu.memory_space<vmem>>, %arg5: memref<2x32xf32, #tpu.memory_space<vmem>>, %arg6: memref<2x8x128xf32, #tpu.memory_space<vmem>>) attributes {dimension_semantics = [#tpu.dimension_semantics<parallel>], iteration_bounds = array<i64: 1>, scalar_prefetch = 0 : i64, scratch_operands = 0 : i64, tpu.core_type = #tpu.core_type<tc>, window_params = [{transform_indices = @transform_0, window_bounds = array<i64: 16, 32>}, {transform_indices = @transform_1, window_bounds = array<i64: 256, 32>}, {transform_indices = @transform_2, window_bounds = array<i64: 2, 128>}, {pipeline_mode = #tpu.pipeline_mode<synchronous>, transform_indices = @transform_3, window_bounds = array<i64: 2, 32, 32>}, {pipeline_mode = #tpu.pipeline_mode<synchronous>, transform_indices = @transform_4, window_bounds = array<i64: 2, 32>}, {transform_indices = @transform_5, window_bounds = array<i64: 2, 8, 128>}]} {
    %c0 = arith.constant 0 : index
    %c0_0 = arith.constant 0 : index
    %c0_1 = arith.constant 0 : index
    %0 = vector.load %arg4[%c0, %c0_0, %c0_1] : memref<2x32x32xf32, #tpu.memory_space<vmem>>, vector<1x32x32xf32>
    %1 = vector.shape_cast %0 : vector<1x32x32xf32> to vector<32x32xf32>
    %c1 = arith.constant 1 : index
    %c0_2 = arith.constant 0 : index
    %c0_3 = arith.constant 0 : index
    %2 = vector.load %arg4[%c1, %c0_2, %c0_3] : memref<2x32x32xf32, #tpu.memory_space<vmem>>, vector<1x32x32xf32>
    %3 = vector.shape_cast %2 : vector<1x32x32xf32> to vector<32x32xf32>
    %c0_4 = arith.constant 0 : index
    %c0_5 = arith.constant 0 : index
    %4 = vector.load %arg5[%c0_4, %c0_5] : memref<2x32xf32, #tpu.memory_space<vmem>>, vector<1x32xf32>
    %c1_6 = arith.constant 1 : index
    %c0_7 = arith.constant 0 : index
    %5 = vector.load %arg5[%c1_6, %c0_7] : memref<2x32xf32, #tpu.memory_space<vmem>>, vector<1x32xf32>
    %c0_8 = arith.constant 0 : index
    %c0_9 = arith.constant 0 : index
    %6 = vector.load %arg1[%c0_8, %c0_9] : memref<16x32xf32, #tpu.memory_space<vmem>>, vector<16x32xf32>
    %cst = arith.constant dense<0.000000e+00> : vector<16x32xf32>
    %7 = tpu.matmul %6, %1, %cst {dimension_numbers = #tpu.dot_dimension_numbers<[1], [0], [0], [1], [0, 0, 1, 1], [], []>} : vector<16x32xf32>, vector<32x32xf32>, vector<16x32xf32> -> vector<16x32xf32>
    %8 = vector.broadcast %4 : vector<1x32xf32> to vector<16x32xf32>
    %9 = arith.addf %7, %8 : vector<16x32xf32>
    %10 = vector.shape_cast %9 : vector<16x32xf32> to vector<2x8x32xf32>
    %c0_10 = arith.constant 0 : index
    %c0_11 = arith.constant 0 : index
    %11 = vector.load %arg2[%c0_10, %c0_11] : memref<256x32xf32, #tpu.memory_space<vmem>>, vector<256x32xf32>
    %cst_12 = arith.constant dense<0.000000e+00> : vector<256x32xf32>
    %12 = tpu.matmul %11, %3, %cst_12 {dimension_numbers = #tpu.dot_dimension_numbers<[1], [0], [0], [1], [0, 0, 1, 1], [], []>} : vector<256x32xf32>, vector<32x32xf32>, vector<256x32xf32> -> vector<256x32xf32>
    %13 = vector.broadcast %5 : vector<1x32xf32> to vector<256x32xf32>
    %14 = arith.addf %12, %13 : vector<256x32xf32>
    %15 = vector.shape_cast %14 : vector<256x32xf32> to vector<2x128x32xf32>
    "tpu.trace_start"() <{level = 10 : i32, message = "bsq,bnq->bsn"}> : () -> ()
    %cst_13 = arith.constant dense<0.000000e+00> : vector<2x8x128xf32>
    %16 = tpu.matmul %10, %15, %cst_13 {dimension_numbers = #tpu.dot_dimension_numbers<[2], [2], [1], [1], [0, 0, 0, 1, 1, 1], [0], [0]>} : vector<2x8x32xf32>, vector<2x128x32xf32>, vector<2x8x128xf32> -> vector<2x8x128xf32>
    "tpu.trace_stop"() : () -> ()
    %cst_14 = arith.constant 0.176776692 : f32
    %17 = vector.broadcast %cst_14 : f32 to vector<2x8x128xf32>
    %18 = arith.mulf %16, %17 : vector<2x8x128xf32>
    %c0_15 = arith.constant 0 : index
    %c0_16 = arith.constant 0 : index
    %19 = vector.load %arg3[%c0_15, %c0_16] : memref<2x128xf32, #tpu.memory_space<vmem>>, vector<2x128xf32>
    %cst_17 = arith.constant 1.000000e+00 : f32
    %20 = vector.broadcast %cst_17 : f32 to vector<2x128xf32>
    %21 = arith.subf %20, %19 : vector<2x128xf32>
    %22 = vector.shape_cast %21 : vector<2x128xf32> to vector<2x1x128xf32>
    %cst_18 = arith.constant -1.000000e+04 : f32
    %23 = vector.broadcast %cst_18 : f32 to vector<2x1x128xf32>
    %24 = arith.mulf %22, %23 : vector<2x1x128xf32>
    %25 = vector.broadcast %24 : vector<2x1x128xf32> to vector<2x8x128xf32>
    %26 = arith.addf %18, %25 : vector<2x8x128xf32>
    %c0_19 = arith.constant 0 : index
    %c0_20 = arith.constant 0 : index
    %c0_21 = arith.constant 0 : index
    %27 = vector.load %arg6[%c0_19, %c0_20, %c0_21] : memref<2x8x128xf32, #tpu.memory_space<vmem>>, vector<2x8x128xf32>
    tpu.vector_store %arg6[%c0_19, %c0_20, %c0_21], %26 {strides = array<i32>} : memref<2x8x128xf32, #tpu.memory_space<vmem>>, vector<2x8x128xf32>,
    return
  }
  func.func @transform_0(%arg0: i32) -> (i32, i32) {
    %c0_i32 = arith.constant 0 : i32
    %c0_i32_0 = arith.constant 0 : i32
    return %arg0, %c0_i32 : i32, i32
  }
  func.func @transform_1(%arg0: i32) -> (i32, i32) {
    %c0_i32 = arith.constant 0 : i32
    %c0_i32_0 = arith.constant 0 : i32
    return %arg0, %c0_i32 : i32, i32
  }
  func.func @transform_2(%arg0: i32) -> (i32, i32) {
    %c0_i32 = arith.constant 0 : i32
    %c0_i32_0 = arith.constant 0 : i32
    return %arg0, %c0_i32 : i32, i32
  }
  func.func @transform_3(%arg0: i32) -> (i32, i32, i32) {
    %c0_i32 = arith.constant 0 : i32
    %c0_i32_0 = arith.constant 0 : i32
    %c0_i32_1 = arith.constant 0 : i32
    %c0_i32_2 = arith.constant 0 : i32
    return %c0_i32, %c0_i32_0, %c0_i32_1 : i32, i32, i32
  }
  func.func @transform_4(%arg0: i32) -> (i32, i32) {
    %c0_i32 = arith.constant 0 : i32
    %c0_i32_0 = arith.constant 0 : i32
    %c0_i32_1 = arith.constant 0 : i32
    return %c0_i32, %c0_i32_0 : i32, i32
  }
  func.func @transform_5(%arg0: i32) -> (i32, i32, i32) {
    %c0_i32 = arith.constant 0 : i32
    %c0_i32_0 = arith.constant 0 : i32
    %c0_i32_1 = arith.constant 0 : i32
    return %arg0, %c0_i32, %c0_i32_0 : i32, i32, i32
  }
}

module attributes {stable_mosaic.version = 11 : i64} {
  func.func @kernel(%arg0: i32, %arg1: memref<16x32xf32, #tpu.memory_space<vmem>>, %arg2: memref<256x32xf32, #tpu.memory_space<vmem>>, %arg3: memref<2x128xf32, #tpu.memory_space<vmem>>, %arg4: memref<2x32x32xf32, #tpu.memory_space<vmem>>, %arg5: memref<2x32xf32, #tpu.memory_space<vmem>>, %arg6: memref<2x8x128xf32, #tpu.memory_space<vmem>>) attributes {dimension_semantics = [#tpu.dimension_semantics<parallel>], iteration_bounds = array<i64: 1>, scalar_prefetch = 0 : i64, scratch_operands = 0 : i64, tpu.core_type = #tpu.core_type<tc>, window_params = [{transform_indices = @transform_0, window_bounds = array<i64: 16, 32>}, {transform_indices = @transform_1, window_bounds = array<i64: 256, 32>}, {transform_indices = @transform_2, window_bounds = array<i64: 2, 128>}, {pipeline_mode = #tpu.pipeline_mode<synchronous>, transform_indices = @transform_3, window_bounds = array<i64: 2, 32, 32>}, {pipeline_mode = #tpu.pipeline_mode<synchronous>, transform_indices = @transform_4, window_bounds = array<i64: 2, 32>}, {transform_indices = @transform_5, window_bounds = array<i64: 2, 8, 128>}]} {
    %c0 = arith.constant 0 : index
    %c0_0 = arith.constant 0 : index
    %c0_1 = arith.constant 0 : index
    %0 = vector.load %arg4[%c0, %c0_0, %c0_1] : memref<2x32x32xf32, #tpu.memory_space<vmem>>, vector<1x32x32xf32>
    %1 = vector.shape_cast %0 : vector<1x32x32xf32> to vector<32x32xf32>
    %c1 = arith.constant 1 : index
    %c0_2 = arith.constant 0 : index
    %c0_3 = arith.constant 0 : index
    %2 = vector.load %arg4[%c1, %c0_2, %c0_3] : memref<2x32x32xf32, #tpu.memory_space<vmem>>, vector<1x32x32xf32>
    %3 = vector.shape_cast %2 : vector<1x32x32xf32> to vector<32x32xf32>
    %c0_4 = arith.constant 0 : index
    %c0_5 = arith.constant 0 : index
    %4 = vector.load %arg5[%c0_4, %c0_5] : memref<2x32xf32, #tpu.memory_space<vmem>>, vector<1x32xf32>
    %c1_6 = arith.constant 1 : index
    %c0_7 = arith.constant 0 : index
    %5 = vector.load %arg5[%c1_6, %c0_7] : memref<2x32xf32, #tpu.memory_space<vmem>>, vector<1x32xf32>
    %c0_8 = arith.constant 0 : index
    %c0_9 = arith.constant 0 : index
    %6 = vector.load %arg1[%c0_8, %c0_9] : memref<16x32xf32, #tpu.memory_space<vmem>>, vector<16x32xf32>
    %cst = arith.constant dense<0.000000e+00> : vector<16x32xf32>
    %7 = tpu.matmul %6, %1, %cst {dimension_numbers = #tpu.dot_dimension_numbers<[1], [0], [0], [1], [0, 0, 1, 1], [], []>} : vector<16x32xf32>, vector<32x32xf32>, vector<16x32xf32> -> vector<16x32xf32>
    %8 = vector.broadcast %4 : vector<1x32xf32> to vector<16x32xf32>
    %9 = arith.addf %7, %8 : vector<16x32xf32>
    %10 = vector.shape_cast %9 : vector<16x32xf32> to vector<2x8x32xf32>
    %c0_10 = arith.constant 0 : index
    %c0_11 = arith.constant 0 : index
    %11 = vector.load %arg2[%c0_10, %c0_11] : memref<256x32xf32, #tpu.memory_space<vmem>>, vector<256x32xf32>
    %cst_12 = arith.constant dense<0.000000e+00> : vector<256x32xf32>
    %12 = tpu.matmul %11, %3, %cst_12 {dimension_numbers = #tpu.dot_dimension_numbers<[1], [0], [0], [1], [0, 0, 1, 1], [], []>} : vector<256x32xf32>, vector<32x32xf32>, vector<256x32xf32> -> vector<256x32xf32>
    %13 = vector.broadcast %5 : vector<1x32xf32> to vector<256x32xf32>
    %14 = arith.addf %12, %13 : vector<256x32xf32>
    %15 = vector.shape_cast %14 : vector<256x32xf32> to vector<2x128x32xf32>
    "tpu.trace_start"() <{level = 10 : i32, message = "bsq,bnq->bsn"}> : () -> ()
    %cst_13 = arith.constant dense<0.000000e+00> : vector<2x8x128xf32>
    %16 = tpu.matmul %10, %15, %cst_13 {dimension_numbers = #tpu.dot_dimension_numbers<[2], [2], [1], [1], [0, 0, 0, 1, 1, 1], [0], [0]>} : vector<2x8x32xf32>, vector<2x128x32xf32>, vector<2x8x128xf32> -> vector<2x8x128xf32>
    "tpu.trace_stop"() : () -> ()
    %cst_14 = arith.constant 0.176776692 : f32
    %17 = vector.broadcast %cst_14 : f32 to vector<2x8x128xf32>
    %18 = arith.mulf %16, %17 : vector<2x8x128xf32>
    %c0_15 = arith.constant 0 : index
    %c0_16 = arith.constant 0 : index
    %19 = vector.load %arg3[%c0_15, %c0_16] : memref<2x128xf32, #tpu.memory_space<vmem>>, vector<2x128xf32>
    %cst_17 = arith.constant 1.000000e+00 : f32
    %20 = vector.broadcast %cst_17 : f32 to vector<2x128xf32>
    %21 = arith.subf %20, %19 : vector<2x128xf32>
    %22 = vector.shape_cast %21 : vector<2x128xf32> to vector<2x1x128xf32>
    %cst_18 = arith.constant -1.000000e+04 : f32
    %23 = vector.broadcast %cst_18 : f32 to vector<2x1x128xf32>
    %24 = arith.mulf %22, %23 : vector<2x1x128xf32>
    %25 = vector.broadcast %24 : vector<2x1x128xf32> to vector<2x8x128xf32>
    %26 = arith.addf %18, %25 : vector<2x8x128xf32>
    %c0_19 = arith.constant 0 : index
    %c0_20 = arith.constant 0 : index
    %c0_21 = arith.constant 0 : index
    %27 = vector.load %arg6[%c0_19, %c0_20, %c0_21] : memref<2x8x128xf32, #tpu.memory_space<vmem>>, vector<2x8x128xf32>
    tpu.vector_store %arg6[%c0_19, %c0_20, %c0_21], %26 {strides = array<i32>} : memref<2x8x128xf32, #tpu.memory_space<vmem>>, vector<2x8x128xf32>,
    return
  }
  func.func @transform_0(%arg0: i32) -> (i32, i32) {
    %c0_i32 = arith.constant 0 : i32
    %c0_i32_0 = arith.constant 0 : i32
    return %arg0, %c0_i32 : i32, i32
  }
  func.func @transform_1(%arg0: i32) -> (i32, i32) {
    %c0_i32 = arith.constant 0 : i32
    %c0_i32_0 = arith.constant 0 : i32
    return %arg0, %c0_i32 : i32, i32
  }
  func.func @transform_2(%arg0: i32) -> (i32, i32) {
    %c0_i32 = arith.constant 0 : i32
    %c0_i32_0 = arith.constant 0 : i32
    return %arg0, %c0_i32 : i32, i32
  }
  func.func @transform_3(%arg0: i32) -> (i32, i32, i32) {
    %c0_i32 = arith.constant 0 : i32
    %c0_i32_0 = arith.constant 0 : i32
    %c0_i32_1 = arith.constant 0 : i32
    %c0_i32_2 = arith.constant 0 : i32
    return %c0_i32, %c0_i32_0, %c0_i32_1 : i32, i32, i32
  }
  func.func @transform_4(%arg0: i32) -> (i32, i32) {
    %c0_i32 = arith.constant 0 : i32
    %c0_i32_0 = arith.constant 0 : i32
    %c0_i32_1 = arith.constant 0 : i32
    return %c0_i32, %c0_i32_0 : i32, i32
  }
  func.func @transform_5(%arg0: i32) -> (i32, i32, i32) {
    %c0_i32 = arith.constant 0 : i32
    %c0_i32_0 = arith.constant 0 : i32
    %c0_i32_1 = arith.constant 0 : i32
    return %arg0, %c0_i32, %c0_i32_0 : i32, i32, i32
  }
}

</mosaic_0001>

<bundles_post_ra>
// kernel: tpu_custom_call.1
= control target key start
LH: loop header
LB: loop body
LE: loop exit
PB: predicated region body
PF: predicated region fallthrough
CT: control target
= control target key end

     0   :  { %vm38_vm0 = vcmask 261120   ;;  %s1494_s0 = inlined_call_operand.vmem [shape: f32[16,32], index: 0, kind: input, shape index: {}]   ;;  %s1495_s1 = inlined_call_operand.vmem [shape: f32[256,32], index: 1, kind: input, shape index: {}]   ;;  %s1496_s2 = inlined_call_operand.vmem [shape: f32[2,128], index: 2, kind: input, shape index: {}]   ;;  %s1497_s3 = inlined_call_operand.vmem [shape: f32[2,32,32], index: 3, kind: input, shape index: {}]   ;;  %s1498_s4 = inlined_call_operand.vmem [shape: f32[2,32], index: 4, kind: input, shape index: {}]   ;;  %s1499_s5 = inlined_call_operand.hbm [shape: f32[2,8,128], index: 5, kind: output, shape index: {}]  }
   0x1   :  { %v782_v0 = vld [vmem:[%s1497_s3 + $0x20] sm:$0xff]  ;;  %v783_v1 = vld [vmem:[%s1497_s3 + $0x28] sm:$0xff]  ;;  %v784_v2 = vld [vmem:[%s1497_s3 + $0x30] sm:$0xff] }
   0x2   :  { %v1077_v3 = vpack.c.bf16 %v783_v1, %v782_v0  ;;  %v785_v4 = vld [vmem:[%s1497_s3 + $0x38] sm:$0xff]  ;;  %v120_v5 = vld [vmem:[%s1495_s1] sm:$0xff]  ;;  %v121_v7 = vld [vmem:[%s1495_s1 + $0x8] sm:$0xff] }
   0x3   :  { %v1081_v6 = vpack.c.bf16 %v785_v4, %v784_v2  ;;  %951 = vmatprep.mubr.msk.f32.mxu1 %vm38_vm0, %v120_v5  ;;  %v122_v8 = vld [vmem:[%s1495_s1 + $0x10] sm:$0xff]  ;;  %v123_v9 = vld [vmem:[%s1495_s1 + $0x18] sm:$0xff]  ;;  %v21_v10 = vld [vmem:[%s1497_s3] sm:$0xff] }
   0x4   :  { %1078 = vmatprep.subr.bf16.mxu1 %v1077_v3  ;;  %v22_v11 = vld [vmem:[%s1497_s3 + $0x8] sm:$0xff]  ;;  %v23_v12 = vld [vmem:[%s1497_s3 + $0x10] sm:$0xff]  ;;  %v124_v13 = vld [vmem:[%s1495_s1 + $0x20] sm:$0xff] }
   0x5   :  { %1080 = vmatpush3.bf16.msra.mxu1 %v1077_v3  ;;  %v1069_v14 = vpack.c.bf16 %v22_v11, %v21_v10  ;;  %v24_v15 = vld [vmem:[%s1497_s3 + $0x18] sm:$0xff]  ;;  %v32_v16 = vld [vmem:[%s1494_s0] sm:$0xff] }
   0x6   :  { %1082 = vmatprep.subr.bf16.mxu1 %v1081_v6  ;;  %v1073_v17 = vpack.c.bf16 %v24_v15, %v23_v12  ;;  %940 = vmatprep.mubr.msk.f32.mxu0 %vm38_vm0, %v32_v16 }
   0x9   :  { %1084 = vmatpush3.bf16.msra.mxu1 %v1081_v6 }
   0xc   :  { %952 = vmatmul.mubr.msk.f32.vlgmr.msra.gmra.mrb[0].mxu1 %vm38_vm0, %v121_v7 }
   0xd   :  { %954 = vmatprep.mubr.msk.f32.mxu1 %vm38_vm0, %v122_v8 }
   0xe   :  { %10 = vsyncpa [#allocation3], 0  ;;  %1070 = vmatprep.subr.bf16.mxu0 %v1069_v14  ;;  %v125_v18 = vld [vmem:[%s1495_s1 + $0x28] sm:$0xff]  ;;  %v126_v19 = vld [vmem:[%s1495_s1 + $0x30] sm:$0xff]  ;;  %v1180_v46 = vmov 0.0|0.0   ;;  %vm1181_vm1 = vmmov 0  }
   0xf   :  { %1072 = vmatpush3.bf16.msra.mxu0 %v1069_v14  ;;  %v127_v20 = vld [vmem:[%s1495_s1 + $0x38] sm:$0xff]  ;;  %v33_v21 = vld [vmem:[%s1494_s0 + $0x8] sm:$0xff]  ;;  %v128_v22 = vld [vmem:[%s1495_s1 + $0x40] sm:$0xff]  ;;  %1117 = vmatprep.subr.bf16.mxu1 %v1180_v46  ;;  %v1182_v47 = vmov 0.0   ;;  %s1184_s26 = smov [#allocation2]  }
  0x10   :  { %955 = vmatmul.mubr.msk.f32.gmra.mrb[2].mxu1 %vm38_vm0, %v123_v9  ;;  %1074 = vmatprep.subr.bf16.mxu0 %v1073_v17  ;;  %v129_v23 = vld [vmem:[%s1495_s1 + $0x48] sm:$0xff]  ;;  %v130_v24 = vld [vmem:[%s1495_s1 + $0x50] sm:$0xff]  ;;  %v131_v25 = vld [vmem:[%s1495_s1 + $0x58] sm:$0xff]  ;;  %s771_s27 = sshll.u32 %s1184_s26, 4  ;;  %s772_s27 = int_to_ptr.vmem [resolvable:$true] %s771_s27 }
  0x11   :  { %957 = vmatprep.mubr.msk.f32.mxu1 %vm38_vm0, %v124_v13  ;;  %v132_v26 = vld [vmem:[%s1495_s1 + $0x60] sm:$0xff]  ;;  %v133_v27 = vld [vmem:[%s1495_s1 + $0x68] sm:$0xff]  ;;  %v134_v28 = vld [vmem:[%s1495_s1 + $0x70] sm:$0xff]  ;;  %p1161_p1 = scmp.lt.s32.totalorder %s772_s27, %s772_s27 }
  0x12   :  { %v135_v29 = vld [vmem:[%s1495_s1 + $0x78] sm:$0xff]  ;;  %v136_v30 = vld [vmem:[%s1495_s1 + $0x80] sm:$0xff]  ;;  %v137_v31 = vld [vmem:[%s1495_s1 + $0x88] sm:$0xff] }
  0x13   :  { %1076 = vmatpush3.bf16.msra.mxu0 %v1073_v17  ;;  %v138_v32 = vld [vmem:[%s1495_s1 + $0x90] sm:$0xff]  ;;  %v139_v33 = vld [vmem:[%s1495_s1 + $0x98] sm:$0xff]  ;;  %v140_v34 = vld [vmem:[%s1495_s1 + $0xa0] sm:$0xff] }
  0x14   :  { %958 = vmatmul.mubr.msk.f32.gmra.mrb[4].mxu1 %vm38_vm0, %v125_v18  ;;  %v141_v35 = vld [vmem:[%s1495_s1 + $0xa8] sm:$0xff]  ;;  %v142_v36 = vld [vmem:[%s1495_s1 + $0xb0] sm:$0xff]  ;;  %v143_v37 = vld [vmem:[%s1495_s1 + $0xb8] sm:$0xff]  ;;  %1085 = vmatprep.subr.bf16.mxu0 %v1180_v46 }
  0x15   :  { %960 = vmatprep.mubr.msk.f32.mxu1 %vm38_vm0, %v126_v19  ;;  %v144_v38 = vld [vmem:[%s1495_s1 + $0xc0] sm:$0xff]  ;;  %v145_v39 = vld [vmem:[%s1495_s1 + $0xc8] sm:$0xff]  ;;  %v146_v40 = vld [vmem:[%s1495_s1 + $0xd0] sm:$0xff] }
  0x16   :  { %941 = vmatmul.mubr.msk.f32.vlgmr.msra.gmra.mrb[0].mxu0 %vm38_vm0, %v33_v21  ;;  %v147_v41 = vld [vmem:[%s1495_s1 + $0xd8] sm:$0xff]  ;;  %v148_v42 = vld [vmem:[%s1495_s1 + $0xe0] sm:$0xff]  ;;  %v149_v43 = vld [vmem:[%s1495_s1 + $0xe8] sm:$0xff] }
  0x17   :  { %v150_v44 = vld [vmem:[%s1495_s1 + $0xf0] sm:$0xff]  ;;  %v151_v45 = vld [vmem:[%s1495_s1 + $0xf8] sm:$0xff]  ;;  %1031 = vmatprep.mubr.msk.f32.mxu0 %vm1181_vm1, %v1182_v47  ;;  %v1382_v48 = vld [vmem:[%s1498_s4 + $0x1] ss:$0 sm:$0xff] }
  0x18   :  { %961 = vmatmul.mubr.msk.f32.gmra.mrb[6].mxu1 %vm38_vm0, %v127_v20  ;;  %vm1388_vm2 = vmpackc.low %vm38_vm0, %vm38_vm0 }
  0x19   :  { %963 = vmatprep.mubr.msk.f32.mxu1 %vm38_vm0, %v128_v22 }
  0x1c   :  { %964 = vmatmul.mubr.msk.f32.gmra.mrb[8].mxu1 %vm38_vm0, %v129_v23 }
  0x1d   :  { %966 = vmatprep.mubr.msk.f32.mxu1 %vm38_vm0, %v130_v24 }
  0x20   :  { %967 = vmatmul.mubr.msk.f32.gmra.mrb[10].mxu1 %vm38_vm0, %v131_v25 }
  0x21   :  { %969 = vmatprep.mubr.msk.f32.mxu1 %vm38_vm0, %v132_v26 }
  0x24   :  { %970 = vmatmul.mubr.msk.f32.gmra.mrb[12].mxu1 %vm38_vm0, %v133_v27 }
  0x25   :  { %972 = vmatprep.mubr.msk.f32.mxu1 %vm38_vm0, %v134_v28 }
  0x28   :  { %973 = vmatmul.mubr.msk.f32.gmra.mrb[14].mxu1 %vm38_vm0, %v135_v29 }
  0x29   :  { %975 = vmatprep.mubr.msk.f32.mxu1 %vm38_vm0, %v136_v30 }
  0x2c   :  { %976 = vmatmul.mubr.msk.f32.gmra.mrb[16].mxu1 %vm38_vm0, %v137_v31 }
  0x2d   :  { %978 = vmatprep.mubr.msk.f32.mxu1 %vm38_vm0, %v138_v32 }
  0x30   :  { %979 = vmatmul.mubr.msk.f32.gmra.mrb[18].mxu1 %vm38_vm0, %v139_v33 }
  0x31   :  { %981 = vmatprep.mubr.msk.f32.mxu1 %vm38_vm0, %v140_v34 }
  0x34   :  { %982 = vmatmul.mubr.msk.f32.gmra.mrb[20].mxu1 %vm38_vm0, %v141_v35 }
  0x35   :  { %984 = vmatprep.mubr.msk.f32.mxu1 %vm38_vm0, %v142_v36 }
  0x38   :  { %985 = vmatmul.mubr.msk.f32.gmra.mrb[22].mxu1 %vm38_vm0, %v143_v37 }
  0x39   :  { %987 = vmatprep.mubr.msk.f32.mxu1 %vm38_vm0, %v144_v38 }
  0x3c   :  { %988 = vmatmul.mubr.msk.f32.gmra.mrb[24].mxu1 %vm38_vm0, %v145_v39 }
  0x3d   :  { %990 = vmatprep.mubr.msk.f32.mxu1 %vm38_vm0, %v146_v40 }
  0x40   :  { %991 = vmatmul.mubr.msk.f32.gmra.mrb[26].mxu1 %vm38_vm0, %v147_v41 }
  0x41   :  { %993 = vmatprep.mubr.msk.f32.mxu1 %vm38_vm0, %v148_v42 }
  0x44   :  { %994 = vmatmul.mubr.msk.f32.gmra.mrb[28].mxu1 %vm38_vm0, %v149_v43 }
  0x45   :  { %996 = vmatprep.mubr.msk.f32.mxu1 %vm38_vm0, %v150_v44 }
  0x48   :  { %997 = vmatmul.mubr.msk.f32.gmra.mrb[30].mxu1 %vm38_vm0, %v151_v45 }
  0x49   :  { %1066 = vmatprep.mubr.msk.f32.mxu1 %vm1181_vm1, %v1182_v47 }
  0xdf   :  { %v953_v49 = vpop.f32.mrb[0].mxu1 }
  0xe0   :  { %v324_v50 = vadd.f32 %v953_v49, %v1382_v48  ;;  %v318_v51 = vpop.f32.mrb[1].mxu1 }
  0xe1   :  { %v319_v52 = vadd.f32 %v1382_v48, %v318_v51 }
  0xe3   :  { %v1086_v54 = vpack.c.bf16 %v324_v50, %v319_v52  ;;  %v956_v55 = vpop.f32.mrb[2].mxu1 }
  0xe4   :  { %v334_v56 = vadd.f32 %v956_v55, %v1382_v48  ;;  %v328_v57 = vpop.f32.mrb[3].mxu1 }
  0xe5   :  { %v329_v58 = vadd.f32 %v1382_v48, %v328_v57  ;;  %1088 = vmatpush3.bf16.xpose.msk.msra.mxu0 %vm1388_vm2, %v1086_v54 }
  0xe6   :  { %1089 = vmatprep.subr.bf16.mxu0 %v1180_v46 }
  0xe7   :  { %v1090_v59 = vpack.c.bf16 %v334_v56, %v329_v58  ;;  %v959_v60 = vpop.f32.mrb[4].mxu1 }
  0xe8   :  { %v344_v61 = vadd.f32 %v959_v60, %v1382_v48  ;;  %v338_v62 = vpop.f32.mrb[5].mxu1 }
  0xe9   :  { %v339_v63 = vadd.f32 %v1382_v48, %v338_v62  ;;  %v1399_v2 = vpop.f32.mrb[0].mxu0 }
  0xea   :  { %v1402_v5 = vpop.f32.mrb[1].mxu0 }
  0xeb   :  { %v1094_v0 = vpack.c.bf16 %v344_v61, %v339_v63  ;;  %v962_v1 = vpop.f32.mrb[6].mxu1 }
  0xec   :  { %v354_v3 = vadd.f32 %v962_v1, %v1382_v48  ;;  %v348_v4 = vpop.f32.mrb[7].mxu1 }
  0xed   :  { %v349_v6 = vadd.f32 %v1382_v48, %v348_v4  ;;  %1092 = vmatpush3.bf16.xpose.msk.msra.mxu0 %vm1388_vm2, %v1090_v59 }
  0xee   :  { %1093 = vmatprep.subr.bf16.mxu0 %v1180_v46 }
  0xef   :  { %v1098_v7 = vpack.c.bf16 %v354_v3, %v349_v6  ;;  %v965_v8 = vpop.f32.mrb[8].mxu1 }
  0xf0   :  { %v364_v9 = vadd.f32 %v965_v8, %v1382_v48  ;;  %v358_v10 = vpop.f32.mrb[9].mxu1  ;;  %v786_v8 = vld [vmem:[%s1498_s4] ss:$0 sm:$0xff] }
  0xf1   :  { %v359_v11 = vadd.f32 %v1382_v48, %v358_v10  ;;  %v112_v10 = vadd.f32 %v786_v8, %v1402_v5  ;;  %v1183_v5 = vmov 1966171168  }
  0xf3   :  { %v1102_v12 = vpack.c.bf16 %v364_v9, %v359_v11  ;;  %v968_v13 = vpop.f32.mrb[10].mxu1  ;;  %v725_v11 = vunpack.c.l.s4 %v1183_v5 }
  0xf4   :  { %v374_v14 = vadd.f32 %v968_v13, %v1382_v48  ;;  %v368_v15 = vpop.f32.mrb[11].mxu1 }
  0xf5   :  { %v369_v16 = vadd.f32 %v1382_v48, %v368_v15  ;;  %1096 = vmatpush3.bf16.xpose.msk.msra.mxu0 %vm1388_vm2, %v1094_v0  ;;  %v726_v13 = vunpack.c.0.s8 %v725_v11  ;;  %v721_v15 = vld [vmem:[%s1496_s2] sm:$0x3]  ;;  %s1156_s2 = scalar_lea.vmem %s772_s27, 256 }
  0xf6   :  { %1097 = vmatprep.subr.bf16.mxu0 %v1180_v46  ;;  %p1157_p0 = scmp.ne.s32.totalorder %s772_s27, %s1156_s2  ;;  %p1162_p2 = scmp.lt.s32.totalorder %s1156_s2, %s1156_s2 }
  0xf7   :  { %v1106_v17 = vpack.c.bf16 %v374_v14, %v369_v16  ;;  %v971_v18 = vpop.f32.mrb[12].mxu1  ;;  %v722_v16 = vsub.f32 1.0, %v721_v15 }
  0xf8   :  { %v384_v19 = vadd.f32 %v971_v18, %v1382_v48  ;;  %v378_v20 = vpop.f32.mrb[13].mxu1  ;;  %p1163_p3 = por %p1162_p2, %p1161_p1 }
  0xf9   :  { %v379_v21 = vadd.f32 %v1382_v48, %v378_v20 }
  0xfa   :  { %p1164_p4 = pnand %p1163_p3, %p1157_p0 }
  0xfb   :  { %v1110_v22 = vpack.c.bf16 %v384_v19, %v379_v21  ;;  %v974_v23 = vpop.f32.mrb[14].mxu1 }
  0xfc   :  { %v394_v24 = vadd.f32 %v974_v23, %v1382_v48  ;;  %v388_v25 = vpop.f32.mrb[15].mxu1 }
  0xfd   :  { %v389_v26 = vadd.f32 %v1382_v48, %v388_v25  ;;  %1100 = vmatpush3.bf16.xpose.msk.msra.mxu0 %vm1388_vm2, %v1098_v7 }
  0xfe   :  { %1101 = vmatprep.subr.bf16.mxu0 %v1180_v46 }
  0xff   :  { %v1114_v27 = vpack.c.bf16 %v394_v24, %v389_v26  ;;  %v977_v28 = vpop.f32.mrb[16].mxu1 }
 0x100   :  { %v404_v29 = vadd.f32 %v977_v28, %v1382_v48  ;;  %v398_v30 = vpop.f32.mrb[17].mxu1 }
 0x101   :  { %v399_v31 = vadd.f32 %v1382_v48, %v398_v30 }
 0x103   :  { %v1118_v32 = vpack.c.bf16 %v404_v29, %v399_v31  ;;  %v980_v33 = vpop.f32.mrb[18].mxu1 }
 0x104   :  { %v414_v34 = vadd.f32 %v980_v33, %v1382_v48  ;;  %v408_v35 = vpop.f32.mrb[19].mxu1 }
 0x105   :  { %1104 = vmatpush3.bf16.xpose.msk.msra.mxu0 %vm1388_vm2, %v1102_v12  ;;  %1120 = vmatpush3.bf16.xpose.msk.msra.mxu1 %vm1388_vm2, %v1118_v32  ;;  %v409_v36 = vadd.f32 %v1382_v48, %v408_v35  ;;  %v727_v12 = vlaneseq }
 0x106   :  { %1105 = vmatprep.subr.bf16.mxu0 %v1180_v46  ;;  %1121 = vmatprep.subr.bf16.mxu1 %v1180_v46 }
 0x107   :  { %v1122_v37 = vpack.c.bf16 %v414_v34, %v409_v36  ;;  %v983_v38 = vpop.f32.mrb[20].mxu1  ;;  %v728_v14 = vshrl.u32 %v727_v12, 7 }
 0x108   :  { %v424_v39 = vadd.f32 %v983_v38, %v1382_v48  ;;  %v418_v40 = vpop.f32.mrb[21].mxu1 }
 0x109   :  { %v419_v41 = vadd.f32 %v1382_v48, %v418_v40  ;;  %v754_v53 = vsub.s32 0, %v728_v14 }
 0x10b   :  { %v1126_v42 = vpack.c.bf16 %v424_v39, %v419_v41  ;;  %v986_v43 = vpop.f32.mrb[22].mxu1 }
 0x10c   :  { %v434_v44 = vadd.f32 %v986_v43, %v1382_v48  ;;  %v428_v45 = vpop.f32.mrb[23].mxu1 }
 0x10d   :  { %1108 = vmatpush3.bf16.xpose.msk.msra.mxu0 %vm1388_vm2, %v1106_v17  ;;  %1124 = vmatpush3.bf16.xpose.msk.msra.mxu1 %vm1388_vm2, %v1122_v37  ;;  %v429_v47 = vadd.f32 %v1382_v48, %v428_v45  ;;  %v729_v17 = vsub.s32 %v726_v13, %v728_v14 }
 0x10e   :  { %1109 = vmatprep.subr.bf16.mxu0 %v1180_v46  ;;  %1125 = vmatprep.subr.bf16.mxu1 %v1180_v46 }
 0x10f   :  { %v1130_v49 = vpack.c.bf16 %v434_v44, %v429_v47  ;;  %v989_v50 = vpop.f32.mrb[24].mxu1  ;;  %v730_v18 = vrot.slane %v722_v16, %v729_v17 }
 0x110   :  { %v444_v51 = vadd.f32 %v989_v50, %v1382_v48  ;;  %v438_v52 = vpop.f32.mrb[25].mxu1 }
 0x111   :  { %v439_v54 = vadd.f32 %v1382_v48, %v438_v52  ;;  %v731_v24 = vcombine.high %v730_v18, %v730_v18 }
 0x113   :  { %v1134_v55 = vpack.c.bf16 %v444_v51, %v439_v54  ;;  %v992_v56 = vpop.f32.mrb[26].mxu1  ;;  %v745_v25 = vrot.slane %v731_v24, %v729_v17 }
 0x114   :  { %v454_v57 = vadd.f32 %v992_v56, %v1382_v48  ;;  %v448_v58 = vpop.f32.mrb[27].mxu1 }
 0x115   :  { %1112 = vmatpush3.bf16.xpose.msk.msra.mxu0 %vm1388_vm2, %v1110_v22  ;;  %1128 = vmatpush3.bf16.xpose.msk.msra.mxu1 %vm1388_vm2, %v1126_v42  ;;  %v449_v59 = vadd.f32 %v1382_v48, %v448_v58  ;;  %v749_v26 = vmul.f32 -10000.0, %v745_v25 }
 0x116   :  { %1113 = vmatprep.subr.bf16.mxu0 %v1180_v46  ;;  %1129 = vmatprep.subr.bf16.mxu1 %v1180_v46 }
 0x117   :  { %v1138_v60 = vpack.c.bf16 %v454_v57, %v449_v59  ;;  %v995_v61 = vpop.f32.mrb[28].mxu1 }
 0x118   :  { %v464_v62 = vadd.f32 %v995_v61, %v1382_v48  ;;  %v458_v63 = vpop.f32.mrb[29].mxu1 }
 0x119   :  { %v459_v0 = vadd.f32 %v1382_v48, %v458_v63 }
 0x11b   :  { %v1142_v1 = vpack.c.bf16 %v464_v62, %v459_v0  ;;  %v998_v3 = vpop.f32.mrb[30].mxu1 }
 0x11c   :  { %v474_v4 = vadd.f32 %v998_v3, %v1382_v48  ;;  %v468_v6 = vpop.f32.mrb[31].mxu1 }
 0x11d   :  { %1116 = vmatpush3.bf16.xpose.msk.msra.mxu0 %vm1388_vm2, %v1114_v27  ;;  %1132 = vmatpush3.bf16.xpose.msk.msra.mxu1 %vm1388_vm2, %v1130_v49  ;;  %v469_v7 = vadd.f32 %v1382_v48, %v468_v6  ;;  %v117_v48 = vadd.f32 %v1399_v2, %v786_v8  ;;  %v759_v27 = vrot.slane %v749_v26, %v754_v53 }
 0x11e   :  { %1133 = vmatprep.subr.bf16.mxu1 %v1180_v46 }
 0x11f   :  { %v1146_v9 = vpack.c.bf16 %v474_v4, %v469_v7 }
 0x124   :  { %1032 = vmatmul.mubr.msk.f32.vlgmr.msra.gmra.mrb[2].mxu0 %vm38_vm0, %v112_v10 }
 0x125   :  { %1136 = vmatpush3.bf16.xpose.msk.msra.mxu1 %vm1388_vm2, %v1134_v55 }
 0x126   :  { %1137 = vmatprep.subr.bf16.mxu1 %v1180_v46 }
 0x12d   :  { %1140 = vmatpush3.bf16.xpose.msk.msra.mxu1 %vm1388_vm2, %v1138_v60 }
 0x12e   :  { %1141 = vmatprep.subr.bf16.mxu1 %v1180_v46 }
 0x135   :  { %1144 = vmatpush3.bf16.xpose.msk.msra.mxu1 %vm1388_vm2, %v1142_v1 }
 0x136   :  { %1145 = vmatprep.subr.bf16.mxu1 %v1180_v46  ;;  %v738_v46 = vrot.slane %v730_v18, %v729_v17 }
 0x138   :  { %v748_v19 = vmul.f32 -10000.0, %v738_v46 }
 0x13a   :  { %v755_v20 = vrot.slane %v748_v19, %v754_v53 }
 0x13d   :  { %1148 = vmatpush3.bf16.xpose.msk.msra.mxu1 %vm1388_vm2, %v1146_v9 }
 0x144   :  { %1067 = vmatmul.mubr.msk.f32.vlgmr.msra.gmra.mrb[32].mxu1 %vm38_vm0, %v117_v48 }
 0x1f7   :  { %v594_v21 = vpop.f32.mrb[2].mxu0 }
 0x1f8   :  { %v719_v2 = vmul.f32 0.17677669, %v594_v21  ;;  %v1033_v22 = vpop.f32.mrb[3].mxu0 }
 0x1fa   :  { %v762_v23 = vadd.f32 %v755_v20, %v719_v2 }
 0x1fc   :  { %764 = vst [vmem:[#allocation2] sm:$0xff] %v762_v23 }
 0x217   :  { %v715_v28 = vpop.f32.mrb[32].mxu1 }
 0x218   :  { %v720_v29 = vmul.f32 0.17677669, %v715_v28  ;;  %v1068_v30 = vpop.f32.mrb[33].mxu1 }
 0x21a   :  { %v763_v31 = vadd.f32 %v759_v27, %v720_v29 }
 0x21c   :  { %765 = vst [vmem:[#allocation2 + $0x8] sm:$0xff] %v763_v31 }
 0x21d   :  { %1167 = shalt.err (!%p1164_p4)
}
 0x21e   :  { %s1168_s30 = scalar_lea.hbm %s1499_s5, 256 }
 0x21f   :  { %p1169_p5 = scmp.ne.s32.totalorder %s1499_s5, %s1168_s30  ;;  %p1172_p6 = scmp.lt.u32.totalorder %s1168_s30, %s1499_s5 }
 0x221   :  { %p1174_p7 = pnand %p1172_p6, %p1169_p5 }
 0x223   :  { %1177 = shalt.err (!%p1174_p7)
}
 0x224   :  { %s1185_s9 = smov 128   ;;  %s1186_s10 = smov 8  }
 0x225   :  { %777 = dma.vmem_to_hbm [thread:$0]  %s772_s27, 256, %s1499_s5, [#allocation3], %s1185_s9, %s1185_s9, %s1186_s10  }
 0x226   :  { %1178 = dma.done.wait [#allocation3], 256  }
 0x227   :  { %1179 = vsyncadd [#allocation3], 4294967040 }
 0x228   :  { %781 = vsyncpa [#allocation3], 1 }

// kernel: tpu_custom_call.1
= control target key start
LH: loop header
LB: loop body
LE: loop exit
PB: predicated region body
PF: predicated region fallthrough
CT: control target
= control target key end

     0   :  { %vm38_vm0 = vcmask 261120   ;;  %s1494_s0 = inlined_call_operand.vmem [shape: f32[16,32], index: 0, kind: input, shape index: {}]   ;;  %s1495_s1 = inlined_call_operand.vmem [shape: f32[256,32], index: 1, kind: input, shape index: {}]   ;;  %s1496_s2 = inlined_call_operand.vmem [shape: f32[2,128], index: 2, kind: input, shape index: {}]   ;;  %s1497_s3 = inlined_call_operand.vmem [shape: f32[2,32,32], index: 3, kind: input, shape index: {}]   ;;  %s1498_s4 = inlined_call_operand.vmem [shape: f32[2,32], index: 4, kind: input, shape index: {}]   ;;  %s1499_s5 = inlined_call_operand.hbm [shape: f32[2,8,128], index: 5, kind: output, shape index: {}]  }
   0x1   :  { %v782_v0 = vld [vmem:[%s1497_s3 + $0x20] sm:$0xff]  ;;  %v783_v1 = vld [vmem:[%s1497_s3 + $0x28] sm:$0xff]  ;;  %v784_v2 = vld [vmem:[%s1497_s3 + $0x30] sm:$0xff] }
   0x2   :  { %v1077_v3 = vpack.c.bf16 %v783_v1, %v782_v0  ;;  %v785_v4 = vld [vmem:[%s1497_s3 + $0x38] sm:$0xff]  ;;  %v120_v5 = vld [vmem:[%s1495_s1] sm:$0xff]  ;;  %v121_v7 = vld [vmem:[%s1495_s1 + $0x8] sm:$0xff] }
   0x3   :  { %v1081_v6 = vpack.c.bf16 %v785_v4, %v784_v2  ;;  %951 = vmatprep.mubr.msk.f32.mxu1 %vm38_vm0, %v120_v5  ;;  %v122_v8 = vld [vmem:[%s1495_s1 + $0x10] sm:$0xff]  ;;  %v123_v9 = vld [vmem:[%s1495_s1 + $0x18] sm:$0xff]  ;;  %v21_v10 = vld [vmem:[%s1497_s3] sm:$0xff] }
   0x4   :  { %1078 = vmatprep.subr.bf16.mxu1 %v1077_v3  ;;  %v22_v11 = vld [vmem:[%s1497_s3 + $0x8] sm:$0xff]  ;;  %v23_v12 = vld [vmem:[%s1497_s3 + $0x10] sm:$0xff]  ;;  %v124_v13 = vld [vmem:[%s1495_s1 + $0x20] sm:$0xff] }
   0x5   :  { %1080 = vmatpush3.bf16.msra.mxu1 %v1077_v3  ;;  %v1069_v14 = vpack.c.bf16 %v22_v11, %v21_v10  ;;  %v24_v15 = vld [vmem:[%s1497_s3 + $0x18] sm:$0xff]  ;;  %v32_v16 = vld [vmem:[%s1494_s0] sm:$0xff] }
   0x6   :  { %1082 = vmatprep.subr.bf16.mxu1 %v1081_v6  ;;  %v1073_v17 = vpack.c.bf16 %v24_v15, %v23_v12  ;;  %940 = vmatprep.mubr.msk.f32.mxu0 %vm38_vm0, %v32_v16 }
   0x9   :  { %1084 = vmatpush3.bf16.msra.mxu1 %v1081_v6 }
   0xc   :  { %952 = vmatmul.mubr.msk.f32.vlgmr.msra.gmra.mrb[0].mxu1 %vm38_vm0, %v121_v7 }
   0xd   :  { %954 = vmatprep.mubr.msk.f32.mxu1 %vm38_vm0, %v122_v8 }
   0xe   :  { %10 = vsyncpa [#allocation3], 0  ;;  %1070 = vmatprep.subr.bf16.mxu0 %v1069_v14  ;;  %v125_v18 = vld [vmem:[%s1495_s1 + $0x28] sm:$0xff]  ;;  %v126_v19 = vld [vmem:[%s1495_s1 + $0x30] sm:$0xff]  ;;  %v1180_v46 = vmov 0.0|0.0   ;;  %vm1181_vm1 = vmmov 0  }
   0xf   :  { %1072 = vmatpush3.bf16.msra.mxu0 %v1069_v14  ;;  %v127_v20 = vld [vmem:[%s1495_s1 + $0x38] sm:$0xff]  ;;  %v33_v21 = vld [vmem:[%s1494_s0 + $0x8] sm:$0xff]  ;;  %v128_v22 = vld [vmem:[%s1495_s1 + $0x40] sm:$0xff]  ;;  %1117 = vmatprep.subr.bf16.mxu1 %v1180_v46  ;;  %v1182_v47 = vmov 0.0   ;;  %s1184_s26 = smov [#allocation2]  }
  0x10   :  { %955 = vmatmul.mubr.msk.f32.gmra.mrb[2].mxu1 %vm38_vm0, %v123_v9  ;;  %1074 = vmatprep.subr.bf16.mxu0 %v1073_v17  ;;  %v129_v23 = vld [vmem:[%s1495_s1 + $0x48] sm:$0xff]  ;;  %v130_v24 = vld [vmem:[%s1495_s1 + $0x50] sm:$0xff]  ;;  %v131_v25 = vld [vmem:[%s1495_s1 + $0x58] sm:$0xff]  ;;  %s771_s27 = sshll.u32 %s1184_s26, 4  ;;  %s772_s27 = int_to_ptr.vmem [resolvable:$true] %s771_s27 }
  0x11   :  { %957 = vmatprep.mubr.msk.f32.mxu1 %vm38_vm0, %v124_v13  ;;  %v132_v26 = vld [vmem:[%s1495_s1 + $0x60] sm:$0xff]  ;;  %v133_v27 = vld [vmem:[%s1495_s1 + $0x68] sm:$0xff]  ;;  %v134_v28 = vld [vmem:[%s1495_s1 + $0x70] sm:$0xff]  ;;  %p1161_p1 = scmp.lt.s32.totalorder %s772_s27, %s772_s27 }
  0x12   :  { %v135_v29 = vld [vmem:[%s1495_s1 + $0x78] sm:$0xff]  ;;  %v136_v30 = vld [vmem:[%s1495_s1 + $0x80] sm:$0xff]  ;;  %v137_v31 = vld [vmem:[%s1495_s1 + $0x88] sm:$0xff] }
  0x13   :  { %1076 = vmatpush3.bf16.msra.mxu0 %v1073_v17  ;;  %v138_v32 = vld [vmem:[%s1495_s1 + $0x90] sm:$0xff]  ;;  %v139_v33 = vld [vmem:[%s1495_s1 + $0x98] sm:$0xff]  ;;  %v140_v34 = vld [vmem:[%s1495_s1 + $0xa0] sm:$0xff] }
  0x14   :  { %958 = vmatmul.mubr.msk.f32.gmra.mrb[4].mxu1 %vm38_vm0, %v125_v18  ;;  %v141_v35 = vld [vmem:[%s1495_s1 + $0xa8] sm:$0xff]  ;;  %v142_v36 = vld [vmem:[%s1495_s1 + $0xb0] sm:$0xff]  ;;  %v143_v37 = vld [vmem:[%s1495_s1 + $0xb8] sm:$0xff]  ;;  %1085 = vmatprep.subr.bf16.mxu0 %v1180_v46 }
  0x15   :  { %960 = vmatprep.mubr.msk.f32.mxu1 %vm38_vm0, %v126_v19  ;;  %v144_v38 = vld [vmem:[%s1495_s1 + $0xc0] sm:$0xff]  ;;  %v145_v39 = vld [vmem:[%s1495_s1 + $0xc8] sm:$0xff]  ;;  %v146_v40 = vld [vmem:[%s1495_s1 + $0xd0] sm:$0xff] }
  0x16   :  { %941 = vmatmul.mubr.msk.f32.vlgmr.msra.gmra.mrb[0].mxu0 %vm38_vm0, %v33_v21  ;;  %v147_v41 = vld [vmem:[%s1495_s1 + $0xd8] sm:$0xff]  ;;  %v148_v42 = vld [vmem:[%s1495_s1 + $0xe0] sm:$0xff]  ;;  %v149_v43 = vld [vmem:[%s1495_s1 + $0xe8] sm:$0xff] }
  0x17   :  { %v150_v44 = vld [vmem:[%s1495_s1 + $0xf0] sm:$0xff]  ;;  %v151_v45 = vld [vmem:[%s1495_s1 + $0xf8] sm:$0xff]  ;;  %1031 = vmatprep.mubr.msk.f32.mxu0 %vm1181_vm1, %v1182_v47  ;;  %v1382_v48 = vld [vmem:[%s1498_s4 + $0x1] ss:$0 sm:$0xff] }
  0x18   :  { %961 = vmatmul.mubr.msk.f32.gmra.mrb[6].mxu1 %vm38_vm0, %v127_v20  ;;  %vm1388_vm2 = vmpackc.low %vm38_vm0, %vm38_vm0 }
  0x19   :  { %963 = vmatprep.mubr.msk.f32.mxu1 %vm38_vm0, %v128_v22 }
  0x1c   :  { %964 = vmatmul.mubr.msk.f32.gmra.mrb[8].mxu1 %vm38_vm0, %v129_v23 }
  0x1d   :  { %966 = vmatprep.mubr.msk.f32.mxu1 %vm38_vm0, %v130_v24 }
  0x20   :  { %967 = vmatmul.mubr.msk.f32.gmra.mrb[10].mxu1 %vm38_vm0, %v131_v25 }
  0x21   :  { %969 = vmatprep.mubr.msk.f32.mxu1 %vm38_vm0, %v132_v26 }
  0x24   :  { %970 = vmatmul.mubr.msk.f32.gmra.mrb[12].mxu1 %vm38_vm0, %v133_v27 }
  0x25   :  { %972 = vmatprep.mubr.msk.f32.mxu1 %vm38_vm0, %v134_v28 }
  0x28   :  { %973 = vmatmul.mubr.msk.f32.gmra.mrb[14].mxu1 %vm38_vm0, %v135_v29 }
  0x29   :  { %975 = vmatprep.mubr.msk.f32.mxu1 %vm38_vm0, %v136_v30 }
  0x2c   :  { %976 = vmatmul.mubr.msk.f32.gmra.mrb[16].mxu1 %vm38_vm0, %v137_v31 }
  0x2d   :  { %978 = vmatprep.mubr.msk.f32.mxu1 %vm38_vm0, %v138_v32 }
  0x30   :  { %979 = vmatmul.mubr.msk.f32.gmra.mrb[18].mxu1 %vm38_vm0, %v139_v33 }
  0x31   :  { %981 = vmatprep.mubr.msk.f32.mxu1 %vm38_vm0, %v140_v34 }
  0x34   :  { %982 = vmatmul.mubr.msk.f32.gmra.mrb[20].mxu1 %vm38_vm0, %v141_v35 }
  0x35   :  { %984 = vmatprep.mubr.msk.f32.mxu1 %vm38_vm0, %v142_v36 }
  0x38   :  { %985 = vmatmul.mubr.msk.f32.gmra.mrb[22].mxu1 %vm38_vm0, %v143_v37 }
  0x39   :  { %987 = vmatprep.mubr.msk.f32.mxu1 %vm38_vm0, %v144_v38 }
  0x3c   :  { %988 = vmatmul.mubr.msk.f32.gmra.mrb[24].mxu1 %vm38_vm0, %v145_v39 }
  0x3d   :  { %990 = vmatprep.mubr.msk.f32.mxu1 %vm38_vm0, %v146_v40 }
  0x40   :  { %991 = vmatmul.mubr.msk.f32.gmra.mrb[26].mxu1 %vm38_vm0, %v147_v41 }
  0x41   :  { %993 = vmatprep.mubr.msk.f32.mxu1 %vm38_vm0, %v148_v42 }
  0x44   :  { %994 = vmatmul.mubr.msk.f32.gmra.mrb[28].mxu1 %vm38_vm0, %v149_v43 }
  0x45   :  { %996 = vmatprep.mubr.msk.f32.mxu1 %vm38_vm0, %v150_v44 }
  0x48   :  { %997 = vmatmul.mubr.msk.f32.gmra.mrb[30].mxu1 %vm38_vm0, %v151_v45 }
  0x49   :  { %1066 = vmatprep.mubr.msk.f32.mxu1 %vm1181_vm1, %v1182_v47 }
  0xdf   :  { %v953_v49 = vpop.f32.mrb[0].mxu1 }
  0xe0   :  { %v324_v50 = vadd.f32 %v953_v49, %v1382_v48  ;;  %v318_v51 = vpop.f32.mrb[1].mxu1 }
  0xe1   :  { %v319_v52 = vadd.f32 %v1382_v48, %v318_v51 }
  0xe3   :  { %v1086_v54 = vpack.c.bf16 %v324_v50, %v319_v52  ;;  %v956_v55 = vpop.f32.mrb[2].mxu1 }
  0xe4   :  { %v334_v56 = vadd.f32 %v956_v55, %v1382_v48  ;;  %v328_v57 = vpop.f32.mrb[3].mxu1 }
  0xe5   :  { %v329_v58 = vadd.f32 %v1382_v48, %v328_v57  ;;  %1088 = vmatpush3.bf16.xpose.msk.msra.mxu0 %vm1388_vm2, %v1086_v54 }
  0xe6   :  { %1089 = vmatprep.subr.bf16.mxu0 %v1180_v46 }
  0xe7   :  { %v1090_v59 = vpack.c.bf16 %v334_v56, %v329_v58  ;;  %v959_v60 = vpop.f32.mrb[4].mxu1 }
  0xe8   :  { %v344_v61 = vadd.f32 %v959_v60, %v1382_v48  ;;  %v338_v62 = vpop.f32.mrb[5].mxu1 }
  0xe9   :  { %v339_v63 = vadd.f32 %v1382_v48, %v338_v62  ;;  %v1399_v2 = vpop.f32.mrb[0].mxu0 }
  0xea   :  { %v1402_v5 = vpop.f32.mrb[1].mxu0 }
  0xeb   :  { %v1094_v0 = vpack.c.bf16 %v344_v61, %v339_v63  ;;  %v962_v1 = vpop.f32.mrb[6].mxu1 }
  0xec   :  { %v354_v3 = vadd.f32 %v962_v1, %v1382_v48  ;;  %v348_v4 = vpop.f32.mrb[7].mxu1 }
  0xed   :  { %v349_v6 = vadd.f32 %v1382_v48, %v348_v4  ;;  %1092 = vmatpush3.bf16.xpose.msk.msra.mxu0 %vm1388_vm2, %v1090_v59 }
  0xee   :  { %1093 = vmatprep.subr.bf16.mxu0 %v1180_v46 }
  0xef   :  { %v1098_v7 = vpack.c.bf16 %v354_v3, %v349_v6  ;;  %v965_v8 = vpop.f32.mrb[8].mxu1 }
  0xf0   :  { %v364_v9 = vadd.f32 %v965_v8, %v1382_v48  ;;  %v358_v10 = vpop.f32.mrb[9].mxu1  ;;  %v786_v8 = vld [vmem:[%s1498_s4] ss:$0 sm:$0xff] }
  0xf1   :  { %v359_v11 = vadd.f32 %v1382_v48, %v358_v10  ;;  %v112_v10 = vadd.f32 %v786_v8, %v1402_v5  ;;  %v1183_v5 = vmov 1966171168  }
  0xf3   :  { %v1102_v12 = vpack.c.bf16 %v364_v9, %v359_v11  ;;  %v968_v13 = vpop.f32.mrb[10].mxu1  ;;  %v725_v11 = vunpack.c.l.s4 %v1183_v5 }
  0xf4   :  { %v374_v14 = vadd.f32 %v968_v13, %v1382_v48  ;;  %v368_v15 = vpop.f32.mrb[11].mxu1 }
  0xf5   :  { %v369_v16 = vadd.f32 %v1382_v48, %v368_v15  ;;  %1096 = vmatpush3.bf16.xpose.msk.msra.mxu0 %vm1388_vm2, %v1094_v0  ;;  %v726_v13 = vunpack.c.0.s8 %v725_v11  ;;  %v721_v15 = vld [vmem:[%s1496_s2] sm:$0x3]  ;;  %s1156_s2 = scalar_lea.vmem %s772_s27, 256 }
  0xf6   :  { %1097 = vmatprep.subr.bf16.mxu0 %v1180_v46  ;;  %p1157_p0 = scmp.ne.s32.totalorder %s772_s27, %s1156_s2  ;;  %p1162_p2 = scmp.lt.s32.totalorder %s1156_s2, %s1156_s2 }
  0xf7   :  { %v1106_v17 = vpack.c.bf16 %v374_v14, %v369_v16  ;;  %v971_v18 = vpop.f32.mrb[12].mxu1  ;;  %v722_v16 = vsub.f32 1.0, %v721_v15 }
  0xf8   :  { %v384_v19 = vadd.f32 %v971_v18, %v1382_v48  ;;  %v378_v20 = vpop.f32.mrb[13].mxu1  ;;  %p1163_p3 = por %p1162_p2, %p1161_p1 }
  0xf9   :  { %v379_v21 = vadd.f32 %v1382_v48, %v378_v20 }
  0xfa   :  { %p1164_p4 = pnand %p1163_p3, %p1157_p0 }
  0xfb   :  { %v1110_v22 = vpack.c.bf16 %v384_v19, %v379_v21  ;;  %v974_v23 = vpop.f32.mrb[14].mxu1 }
  0xfc   :  { %v394_v24 = vadd.f32 %v974_v23, %v1382_v48  ;;  %v388_v25 = vpop.f32.mrb[15].mxu1 }
  0xfd   :  { %v389_v26 = vadd.f32 %v1382_v48, %v388_v25  ;;  %1100 = vmatpush3.bf16.xpose.msk.msra.mxu0 %vm1388_vm2, %v1098_v7 }
  0xfe   :  { %1101 = vmatprep.subr.bf16.mxu0 %v1180_v46 }
  0xff   :  { %v1114_v27 = vpack.c.bf16 %v394_v24, %v389_v26  ;;  %v977_v28 = vpop.f32.mrb[16].mxu1 }
 0x100   :  { %v404_v29 = vadd.f32 %v977_v28, %v1382_v48  ;;  %v398_v30 = vpop.f32.mrb[17].mxu1 }
 0x101   :  { %v399_v31 = vadd.f32 %v1382_v48, %v398_v30 }
 0x103   :  { %v1118_v32 = vpack.c.bf16 %v404_v29, %v399_v31  ;;  %v980_v33 = vpop.f32.mrb[18].mxu1 }
 0x104   :  { %v414_v34 = vadd.f32 %v980_v33, %v1382_v48  ;;  %v408_v35 = vpop.f32.mrb[19].mxu1 }
 0x105   :  { %1104 = vmatpush3.bf16.xpose.msk.msra.mxu0 %vm1388_vm2, %v1102_v12  ;;  %1120 = vmatpush3.bf16.xpose.msk.msra.mxu1 %vm1388_vm2, %v1118_v32  ;;  %v409_v36 = vadd.f32 %v1382_v48, %v408_v35  ;;  %v727_v12 = vlaneseq }
 0x106   :  { %1105 = vmatprep.subr.bf16.mxu0 %v1180_v46  ;;  %1121 = vmatprep.subr.bf16.mxu1 %v1180_v46 }
 0x107   :  { %v1122_v37 = vpack.c.bf16 %v414_v34, %v409_v36  ;;  %v983_v38 = vpop.f32.mrb[20].mxu1  ;;  %v728_v14 = vshrl.u32 %v727_v12, 7 }
 0x108   :  { %v424_v39 = vadd.f32 %v983_v38, %v1382_v48  ;;  %v418_v40 = vpop.f32.mrb[21].mxu1 }
 0x109   :  { %v419_v41 = vadd.f32 %v1382_v48, %v418_v40  ;;  %v754_v53 = vsub.s32 0, %v728_v14 }
 0x10b   :  { %v1126_v42 = vpack.c.bf16 %v424_v39, %v419_v41  ;;  %v986_v43 = vpop.f32.mrb[22].mxu1 }
 0x10c   :  { %v434_v44 = vadd.f32 %v986_v43, %v1382_v48  ;;  %v428_v45 = vpop.f32.mrb[23].mxu1 }
 0x10d   :  { %1108 = vmatpush3.bf16.xpose.msk.msra.mxu0 %vm1388_vm2, %v1106_v17  ;;  %1124 = vmatpush3.bf16.xpose.msk.msra.mxu1 %vm1388_vm2, %v1122_v37  ;;  %v429_v47 = vadd.f32 %v1382_v48, %v428_v45  ;;  %v729_v17 = vsub.s32 %v726_v13, %v728_v14 }
 0x10e   :  { %1109 = vmatprep.subr.bf16.mxu0 %v1180_v46  ;;  %1125 = vmatprep.subr.bf16.mxu1 %v1180_v46 }
 0x10f   :  { %v1130_v49 = vpack.c.bf16 %v434_v44, %v429_v47  ;;  %v989_v50 = vpop.f32.mrb[24].mxu1  ;;  %v730_v18 = vrot.slane %v722_v16, %v729_v17 }
 0x110   :  { %v444_v51 = vadd.f32 %v989_v50, %v1382_v48  ;;  %v438_v52 = vpop.f32.mrb[25].mxu1 }
 0x111   :  { %v439_v54 = vadd.f32 %v1382_v48, %v438_v52  ;;  %v731_v24 = vcombine.high %v730_v18, %v730_v18 }
 0x113   :  { %v1134_v55 = vpack.c.bf16 %v444_v51, %v439_v54  ;;  %v992_v56 = vpop.f32.mrb[26].mxu1  ;;  %v745_v25 = vrot.slane %v731_v24, %v729_v17 }
 0x114   :  { %v454_v57 = vadd.f32 %v992_v56, %v1382_v48  ;;  %v448_v58 = vpop.f32.mrb[27].mxu1 }
 0x115   :  { %1112 = vmatpush3.bf16.xpose.msk.msra.mxu0 %vm1388_vm2, %v1110_v22  ;;  %1128 = vmatpush3.bf16.xpose.msk.msra.mxu1 %vm1388_vm2, %v1126_v42  ;;  %v449_v59 = vadd.f32 %v1382_v48, %v448_v58  ;;  %v749_v26 = vmul.f32 -10000.0, %v745_v25 }
 0x116   :  { %1113 = vmatprep.subr.bf16.mxu0 %v1180_v46  ;;  %1129 = vmatprep.subr.bf16.mxu1 %v1180_v46 }
 0x117   :  { %v1138_v60 = vpack.c.bf16 %v454_v57, %v449_v59  ;;  %v995_v61 = vpop.f32.mrb[28].mxu1 }
 0x118   :  { %v464_v62 = vadd.f32 %v995_v61, %v1382_v48  ;;  %v458_v63 = vpop.f32.mrb[29].mxu1 }
 0x119   :  { %v459_v0 = vadd.f32 %v1382_v48, %v458_v63 }
 0x11b   :  { %v1142_v1 = vpack.c.bf16 %v464_v62, %v459_v0  ;;  %v998_v3 = vpop.f32.mrb[30].mxu1 }
 0x11c   :  { %v474_v4 = vadd.f32 %v998_v3, %v1382_v48  ;;  %v468_v6 = vpop.f32.mrb[31].mxu1 }
 0x11d   :  { %1116 = vmatpush3.bf16.xpose.msk.msra.mxu0 %vm1388_vm2, %v1114_v27  ;;  %1132 = vmatpush3.bf16.xpose.msk.msra.mxu1 %vm1388_vm2, %v1130_v49  ;;  %v469_v7 = vadd.f32 %v1382_v48, %v468_v6  ;;  %v117_v48 = vadd.f32 %v1399_v2, %v786_v8  ;;  %v759_v27 = vrot.slane %v749_v26, %v754_v53 }
 0x11e   :  { %1133 = vmatprep.subr.bf16.mxu1 %v1180_v46 }
 0x11f   :  { %v1146_v9 = vpack.c.bf16 %v474_v4, %v469_v7 }
 0x124   :  { %1032 = vmatmul.mubr.msk.f32.vlgmr.msra.gmra.mrb[2].mxu0 %vm38_vm0, %v112_v10 }
 0x125   :  { %1136 = vmatpush3.bf16.xpose.msk.msra.mxu1 %vm1388_vm2, %v1134_v55 }
 0x126   :  { %1137 = vmatprep.subr.bf16.mxu1 %v1180_v46 }
 0x12d   :  { %1140 = vmatpush3.bf16.xpose.msk.msra.mxu1 %vm1388_vm2, %v1138_v60 }
 0x12e   :  { %1141 = vmatprep.subr.bf16.mxu1 %v1180_v46 }
 0x135   :  { %1144 = vmatpush3.bf16.xpose.msk.msra.mxu1 %vm1388_vm2, %v1142_v1 }
 0x136   :  { %1145 = vmatprep.subr.bf16.mxu1 %v1180_v46  ;;  %v738_v46 = vrot.slane %v730_v18, %v729_v17 }
 0x138   :  { %v748_v19 = vmul.f32 -10000.0, %v738_v46 }
 0x13a   :  { %v755_v20 = vrot.slane %v748_v19, %v754_v53 }
 0x13d   :  { %1148 = vmatpush3.bf16.xpose.msk.msra.mxu1 %vm1388_vm2, %v1146_v9 }
 0x144   :  { %1067 = vmatmul.mubr.msk.f32.vlgmr.msra.gmra.mrb[32].mxu1 %vm38_vm0, %v117_v48 }
 0x1f7   :  { %v594_v21 = vpop.f32.mrb[2].mxu0 }
 0x1f8   :  { %v719_v2 = vmul.f32 0.17677669, %v594_v21  ;;  %v1033_v22 = vpop.f32.mrb[3].mxu0 }
 0x1fa   :  { %v762_v23 = vadd.f32 %v755_v20, %v719_v2 }
 0x1fc   :  { %764 = vst [vmem:[#allocation2] sm:$0xff] %v762_v23 }
 0x217   :  { %v715_v28 = vpop.f32.mrb[32].mxu1 }
 0x218   :  { %v720_v29 = vmul.f32 0.17677669, %v715_v28  ;;  %v1068_v30 = vpop.f32.mrb[33].mxu1 }
 0x21a   :  { %v763_v31 = vadd.f32 %v759_v27, %v720_v29 }
 0x21c   :  { %765 = vst [vmem:[#allocation2 + $0x8] sm:$0xff] %v763_v31 }
 0x21d   :  { %1167 = shalt.err (!%p1164_p4)
}
 0x21e   :  { %s1168_s30 = scalar_lea.hbm %s1499_s5, 256 }
 0x21f   :  { %p1169_p5 = scmp.ne.s32.totalorder %s1499_s5, %s1168_s30  ;;  %p1172_p6 = scmp.lt.u32.totalorder %s1168_s30, %s1499_s5 }
 0x221   :  { %p1174_p7 = pnand %p1172_p6, %p1169_p5 }
 0x223   :  { %1177 = shalt.err (!%p1174_p7)
}
 0x224   :  { %s1185_s9 = smov 128   ;;  %s1186_s10 = smov 8  }
 0x225   :  { %777 = dma.vmem_to_hbm [thread:$0]  %s772_s27, 256, %s1499_s5, [#allocation3], %s1185_s9, %s1185_s9, %s1186_s10  }
 0x226   :  { %1178 = dma.done.wait [#allocation3], 256  }
 0x227   :  { %1179 = vsyncadd [#allocation3], 4294967040 }
 0x228   :  { %781 = vsyncpa [#allocation3], 1 }

</bundles_post_ra>
